<compile_context>
chip_gen: v7x
topology: tpu7x:2x2x1
jax: 0.10.0
libtpu: 0.0.40
codegen_flags: <defaults>
</compile_context>

<pallas_src>
import functools

import jax
import jax.numpy as jnp
from jax.experimental import pallas as pl
from jax.experimental.pallas import tpu as pltpu


D_IN, D_H1, D_H2, D_OUT = 17, 32, 16, 1
MAX_TILE_B = 16384  # batch columns per grid step (multiple of 512, lane-aligned)


def _round_up(x, m):
    return ((x + m - 1) // m) * m


def _tanh_dtype():
    """bf16 tanh on v6e/v7x (bf16 EUP path); f32 elsewhere (v5e/v4 have no bf16 EUP)."""
    try:
        kind = jax.devices()[0].device_kind.lower()
    except Exception:  # pragma: no cover - defensive
        return jnp.float32
    return jnp.bfloat16 if ("v6" in kind or "v7" in kind) else jnp.float32


def _choose_tile(batch, max_tile_b):
    # Large tiles amortize the ~0.35 us/step overhead, but keep >=2 grid steps when
    # the batch allows it so v7x's two TensorCores both get work.
    half = -(-batch // 2)  # cdiv(batch, 2)
    t = _round_up(max(half, 1), 512)
    return int(max(512, min(max_tile_b, t)))


def _vmem_limit_bytes(tile_b):
    # Per-step VMEM working set (sublane-padded, double-buffered streams) + slack.
    x_bufs = 2 * 32 * tile_b * 2        # (17, TB) bf16 -> 32 sublanes, 2 buffers
    out_bufs = 2 * 8 * tile_b * 4       # (1, TB) f32 -> 8 sublanes, 2 buffers
    live = (32 + 32 + 16 + 16 + 8) * tile_b * 4  # f32 intermediates (generous)
    weights = 1 << 20
    est = x_bufs + out_bufs + live + weights
    # >= 32 MiB covers v5e's 16 MiB scoped default; <= 48 MiB keeps headroom on
    # v7x's 64 MiB physical VMEM.
    return int(min(48 * (1 << 20), max(32 * (1 << 20), 2 * est)))


def simplenet_kernel(x_ref, w1_ref, b1_ref, w2_ref, b2_ref, w3_ref, b3_ref, o_ref,
                     *, tanh_dtype):
    # Batch-on-lanes layout:
    #   x: (17, TB) bf16   w1: (32, 17) bf16   b1: (32, 1) f32
    #   w2: (16, 32) bf16  b2: (16, 1) f32     w3: (1, 16) bf16  b3: (1, 1) f32
    #   o: (1, TB) f32
    x = x_ref[...]

    # Layer 1: MXU matmul, f32 accumulate, f32 bias add, tanh in tanh_dtype.
    z1 = jnp.dot(w1_ref[...], x, preferred_element_type=jnp.float32) + b1_ref[...]
    h1 = jnp.tanh(z1.astype(tanh_dtype)).astype(jnp.bfloat16)   # (32, TB)

    # dropout(p=0.25) -> identity in eval mode
    # TODO(synk): no PRNG/mask path; add pltpu.prng_* if training-mode parity is needed.

    z2 = jnp.dot(w2_ref[...], h1, preferred_element_type=jnp.float32) + b2_ref[...]
    h2 = jnp.tanh(z2.astype(tanh_dtype)).astype(jnp.bfloat16)   # (16, TB)

    out = jnp.dot(w3_ref[...], h2, preferred_element_type=jnp.float32) + b3_ref[...]
    o_ref[...] = out.astype(o_ref.dtype)                        # (1, TB) f32


def simplenet_forward(x, params, *, max_tile_b=MAX_TILE_B, tile_b=None,
                      x_is_feature_major=False):
    """Fused SimpleNet forward.

    x: (B, 17) float array, or (17, B) if x_is_feature_major=True (lets the producer
       skip the wrapper transpose/cast pass entirely).
    Returns (B, 1) float32 (module parity); take `[:, 0]` if a flat vector is wanted.
    Call under jax.jit so the transpose/cast/pad prep fuses with surrounding ops.
    """
    w1, b1, w2, b2, w3, b3 = params

    if x_is_feature_major:
        assert x.shape[0] == D_IN, x.shape
        B = x.shape[1]
        x_t = x.astype(jnp.bfloat16)
    else:
        assert x.shape[1] == D_IN, x.shape
        B = x.shape[0]
        x_t = jnp.transpose(x).astype(jnp.bfloat16)   # (17, B); fused under jit

    if tile_b is None:
        tile_b = _choose_tile(B, max_tile_b)
    num_tiles = pl.cdiv(B, tile_b)
    b_padded = num_tiles * tile_b
    if b_padded != B:
        x_t = jnp.pad(x_t, ((0, 0), (0, b_padded - B)))

    full = lambda arr: pl.BlockSpec(arr.shape, lambda i: (0, 0))  # VMEM-resident

    # bytes_accessed reflects real DMA volume: x read is 32-sublane-padded bf16,
    # output write is 8-sublane-padded f32.
    weight_bytes = sum(int(a.size) * a.dtype.itemsize for a in (w1, b1, w2, b2, w3, b3))
    cost = pl.CostEstimate(
        flops=2 * b_padded * (D_IN * D_H1 + D_H1 * D_H2 + D_H2 * D_OUT),
        transcendentals=b_padded * (D_H1 + D_H2),
        bytes_accessed=b_padded * (32 * 2 + 8 * 4) + weight_bytes,
    )

    kernel = functools.partial(simplenet_kernel, tanh_dtype=_tanh_dtype())

    out_padded = pl.pallas_call(
        kernel,
        out_shape=jax.ShapeDtypeStruct((D_OUT, b_padded), jnp.float32),
        grid=(num_tiles,),
        in_specs=[
            pl.BlockSpec((D_IN, tile_b), lambda i: (0, i)),  # x tile streams in
            full(w1), full(b1), full(w2), full(b2), full(w3), full(b3),
        ],
        out_specs=pl.BlockSpec((D_OUT, tile_b), lambda i: (0, i)),
        compiler_params=pltpu.CompilerParams(
            dimension_semantics=("parallel",),
            vmem_limit_bytes=_vmem_limit_bytes(tile_b),
        ),
        cost_estimate=cost,
    )(x_t, w1, b1, w2, b2, w3, b3)

    # Flat reshape (no transpose of a materialized (B,1) slab); drop batch padding,
    # then restore the module's (B, 1) output shape.
    return out_padded.reshape(-1)[:B][:, None]


def init_params(key):
    """Deterministic init mimicking torch.nn.Linear default (U[-1/sqrt(fan_in), 1/sqrt(fan_in)]).

    Weights stored as (out, in) bf16 (batch-on-lanes kernel layout); biases as (out, 1) f32.
    """
    def linear(key, fan_in, fan_out):
        kw, kb = jax.random.split(key)
        bound = 1.0 / jnp.sqrt(fan_in)
        w = jax.random.uniform(kw, (fan_out, fan_in), jnp.float32, -bound, bound)
        b = jax.random.uniform(kb, (fan_out, 1), jnp.float32, -bound, bound)
        return w.astype(jnp.bfloat16), b

    k1, k2, k3 = jax.random.split(key, 3)
    w1, b1 = linear(k1, D_IN, D_H1)
    w2, b2 = linear(k2, D_H1, D_H2)
    w3, b3 = linear(k3, D_H2, D_OUT)
    return (w1, b1, w2, b2, w3, b3)


if __name__ == "__main__":
    key = jax.random.PRNGKey(0)
    kx, kp = jax.random.split(key)

    B = 8
    x = jax.random.normal(kx, (B, D_IN), jnp.float32)
    params = init_params(kp)

    # jit so the wrapper transpose + bf16 cast + pad fuse into a single pass over x.
    fwd = jax.jit(simplenet_forward)
    out = jax.block_until_ready(fwd(x, params))
    assert out.shape == (B, 1), out.shape

    # Reference in plain JAX using the same bf16-in / f32-accumulate / tanh-dtype path.
    tanh_dtype = _tanh_dtype()
    w1, b1, w2, b2, w3, b3 = params
    xb = x.astype(jnp.bfloat16).T                                          # (17, B)
    z1 = jnp.dot(w1, xb, preferred_element_type=jnp.float32) + b1
    h1 = jnp.tanh(z1.astype(tanh_dtype)).astype(jnp.bfloat16)
    z2 = jnp.dot(w2, h1, preferred_element_type=jnp.float32) + b2
    h2 = jnp.tanh(z2.astype(tanh_dtype)).astype(jnp.bfloat16)
    ref = (jnp.dot(w3, h2, preferred_element_type=jnp.float32) + b3).T     # (B, 1)

    err = float(jnp.max(jnp.abs(out - ref)))
    assert err < 5e-2, err

    print("KERNEL_OK")
</pallas_src>

<mosaic_0001>
module attributes {stable_mosaic.version = 11 : i64} {
  func.func @simplenet_kernel(%arg0: i32, %arg1: memref<17x512xbf16, #tpu.memory_space<vmem>>, %arg2: memref<32x17xbf16, #tpu.memory_space<vmem>>, %arg3: memref<32x1xf32, #tpu.memory_space<vmem>>, %arg4: memref<16x32xbf16, #tpu.memory_space<vmem>>, %arg5: memref<16x1xf32, #tpu.memory_space<vmem>>, %arg6: memref<1x16xbf16, #tpu.memory_space<vmem>>, %arg7: memref<1x1xf32, #tpu.memory_space<vmem>>, %arg8: memref<1x512xf32, #tpu.memory_space<vmem>>) attributes {dimension_semantics = [#tpu.dimension_semantics<parallel>], iteration_bounds = array<i64: 1>, scalar_prefetch = 0 : i64, scratch_operands = 0 : i64, tpu.core_type = #tpu.core_type<tc>, window_params = [{transform_indices = @transform_0, window_bounds = array<i64: 17, 512>}, {pipeline_mode = #tpu.pipeline_mode<synchronous>, transform_indices = @transform_1, window_bounds = array<i64: 32, 17>}, {pipeline_mode = #tpu.pipeline_mode<synchronous>, transform_indices = @transform_2, window_bounds = array<i64: 32, 1>}, {pipeline_mode = #tpu.pipeline_mode<synchronous>, transform_indices = @transform_3, window_bounds = array<i64: 16, 32>}, {pipeline_mode = #tpu.pipeline_mode<synchronous>, transform_indices = @transform_4, window_bounds = array<i64: 16, 1>}, {pipeline_mode = #tpu.pipeline_mode<synchronous>, transform_indices = @transform_5, window_bounds = array<i64: 1, 16>}, {pipeline_mode = #tpu.pipeline_mode<synchronous>, transform_indices = @transform_6, window_bounds = array<i64: 1, 1>}, {transform_indices = @transform_7, window_bounds = array<i64: 1, 512>}]} {
    %c0 = arith.constant 0 : index
    %c0_0 = arith.constant 0 : index
    %0 = vector.load %arg1[%c0, %c0_0] : memref<17x512xbf16, #tpu.memory_space<vmem>>, vector<17x512xbf16>
    %c0_1 = arith.constant 0 : index
    %c0_2 = arith.constant 0 : index
    %1 = vector.load %arg2[%c0_1, %c0_2] : memref<32x17xbf16, #tpu.memory_space<vmem>>, vector<32x17xbf16>
    %cst = arith.constant dense<0.000000e+00> : vector<32x512xf32>
    %2 = tpu.matmul %1, %0, %cst {dimension_numbers = #tpu.dot_dimension_numbers<[1], [0], [0], [1], [0, 0, 1, 1], [], []>} : vector<32x17xbf16>, vector<17x512xbf16>, vector<32x512xf32> -> vector<32x512xf32>
    %c0_3 = arith.constant 0 : index
    %c0_4 = arith.constant 0 : index
    %3 = vector.load %arg3[%c0_3, %c0_4] : memref<32x1xf32, #tpu.memory_space<vmem>>, vector<32x1xf32>
    %4 = vector.broadcast %3 : vector<32x1xf32> to vector<32x512xf32>
    %5 = arith.addf %2, %4 : vector<32x512xf32>
    %6 = math.tanh %5 : vector<32x512xf32>
    %7 = arith.truncf %6 : vector<32x512xf32> to vector<32x512xbf16>
    %c0_5 = arith.constant 0 : index
    %c0_6 = arith.constant 0 : index
    %8 = vector.load %arg4[%c0_5, %c0_6] : memref<16x32xbf16, #tpu.memory_space<vmem>>, vector<16x32xbf16>
    %cst_7 = arith.constant dense<0.000000e+00> : vector<16x512xf32>
    %9 = tpu.matmul %8, %7, %cst_7 {dimension_numbers = #tpu.dot_dimension_numbers<[1], [0], [0], [1], [0, 0, 1, 1], [], []>} : vector<16x32xbf16>, vector<32x512xbf16>, vector<16x512xf32> -> vector<16x512xf32>
    %c0_8 = arith.constant 0 : index
    %c0_9 = arith.constant 0 : index
    %10 = vector.load %arg5[%c0_8, %c0_9] : memref<16x1xf32, #tpu.memory_space<vmem>>, vector<16x1xf32>
    %11 = vector.broadcast %10 : vector<16x1xf32> to vector<16x512xf32>
    %12 = arith.addf %9, %11 : vector<16x512xf32>
    %13 = math.tanh %12 : vector<16x512xf32>
    %14 = arith.truncf %13 : vector<16x512xf32> to vector<16x512xbf16>
    %c0_10 = arith.constant 0 : index
    %c0_11 = arith.constant 0 : index
    %15 = vector.load %arg6[%c0_10, %c0_11] : memref<1x16xbf16, #tpu.memory_space<vmem>>, vector<1x16xbf16>
    %cst_12 = arith.constant dense<0.000000e+00> : vector<1x512xf32>
    %16 = tpu.matmul %15, %14, %cst_12 {dimension_numbers = #tpu.dot_dimension_numbers<[1], [0], [0], [1], [0, 0, 1, 1], [], []>} : vector<1x16xbf16>, vector<16x512xbf16>, vector<1x512xf32> -> vector<1x512xf32>
    %c0_13 = arith.constant 0 : index
    %c0_14 = arith.constant 0 : index
    %17 = vector.load %arg7[%c0_13, %c0_14] : memref<1x1xf32, #tpu.memory_space<vmem>>, vector<1x1xf32>
    %18 = vector.broadcast %17 : vector<1x1xf32> to vector<1x512xf32>
    %19 = arith.addf %16, %18 : vector<1x512xf32>
    %c0_15 = arith.constant 0 : index
    %c0_16 = arith.constant 0 : index
    %20 = vector.load %arg8[%c0_15, %c0_16] : memref<1x512xf32, #tpu.memory_space<vmem>>, vector<1x512xf32>
    tpu.vector_store %arg8[%c0_15, %c0_16], %19 {strides = array<i32>} : memref<1x512xf32, #tpu.memory_space<vmem>>, vector<1x512xf32>,
    return
  }
  func.func @transform_0(%arg0: i32) -> (i32, i32) {
    %c0_i32 = arith.constant 0 : i32
    %c0_i32_0 = arith.constant 0 : i32
    return %c0_i32, %arg0 : i32, i32
  }
  func.func @transform_1(%arg0: i32) -> (i32, i32) {
    %c0_i32 = arith.constant 0 : i32
    %c0_i32_0 = arith.constant 0 : i32
    %c0_i32_1 = arith.constant 0 : i32
    return %c0_i32, %c0_i32_0 : i32, i32
  }
  func.func @transform_2(%arg0: i32) -> (i32, i32) {
    %c0_i32 = arith.constant 0 : i32
    %c0_i32_0 = arith.constant 0 : i32
    %c0_i32_1 = arith.constant 0 : i32
    return %c0_i32, %c0_i32_0 : i32, i32
  }
  func.func @transform_3(%arg0: i32) -> (i32, i32) {
    %c0_i32 = arith.constant 0 : i32
    %c0_i32_0 = arith.constant 0 : i32
    %c0_i32_1 = arith.constant 0 : i32
    return %c0_i32, %c0_i32_0 : i32, i32
  }
  func.func @transform_4(%arg0: i32) -> (i32, i32) {
    %c0_i32 = arith.constant 0 : i32
    %c0_i32_0 = arith.constant 0 : i32
    %c0_i32_1 = arith.constant 0 : i32
    return %c0_i32, %c0_i32_0 : i32, i32
  }
  func.func @transform_5(%arg0: i32) -> (i32, i32) {
    %c0_i32 = arith.constant 0 : i32
    %c0_i32_0 = arith.constant 0 : i32
    %c0_i32_1 = arith.constant 0 : i32
    return %c0_i32, %c0_i32_0 : i32, i32
  }
  func.func @transform_6(%arg0: i32) -> (i32, i32) {
    %c0_i32 = arith.constant 0 : i32
    %c0_i32_0 = arith.constant 0 : i32
    %c0_i32_1 = arith.constant 0 : i32
    return %c0_i32, %c0_i32_0 : i32, i32
  }
  func.func @transform_7(%arg0: i32) -> (i32, i32) {
    %c0_i32 = arith.constant 0 : i32
    %c0_i32_0 = arith.constant 0 : i32
    return %c0_i32, %arg0 : i32, i32
  }
}

</mosaic_0001>

<bundles_post_ra>
// kernel: simplenet_forward.1
= control target key start
LH: loop header
LB: loop body
LE: loop exit
PB: predicated region body
PF: predicated region fallthrough
CT: control target
= control target key end

     0   :  { %vm110_vm0 = vcmask 1040384   ;;  %v595_v1 = vmov 0   ;;  %vm103_vm1 = vcmask 138240   ;;  %vm274_vm2 = vcmask 261120   ;;  %s706_s0 = inlined_call_operand.vmem [shape: bf16[17,512], index: 0, kind: input, shape index: {}]   ;;  %s707_s6 = inlined_call_operand.<no memory space> [shape: f32[1,1], index: 6, kind: input, shape index: {}]   ;;  %s708_s1 = inlined_call_operand.vmem [shape: bf16[32,17], index: 1, kind: input, shape index: {}]   ;;  %s709_s2 = inlined_call_operand.vmem [shape: f32[32,1], index: 2, kind: input, shape index: {}]   ;;  %s710_s4 = inlined_call_operand.vmem [shape: f32[16,1], index: 4, kind: input, shape index: {}]   ;;  %s711_s3 = inlined_call_operand.vmem [shape: bf16[16,32], index: 3, kind: input, shape index: {}]   ;;  %s712_s5 = inlined_call_operand.vmem [shape: bf16[1,16], index: 5, kind: input, shape index: {}]   ;;  %s713_s7 = inlined_call_operand.vmem [shape: f32[1,512], index: 7, kind: output, shape index: {}]  }
   0x1   :  { %v534_v0 = vld [vmem:[%s706_s0 + $0x4] ss:$16 sps:$4 sm:$0xff]   ;;  %157 = vmatprep.mubr.bf16.mxu0 %v595_v1  ;;  %210 = vmatprep.mubr.bf16.mxu1 %v595_v1  ;;  %v12_v2 = vstv %s707_s6  ;;  %v536_v3 = vld [vmem:[%s706_s0 + $0xc] ss:$16 sps:$4 sm:$0xff]   ;;  %v112_v4 = vsel %vm110_vm0, 65535, %v595_v1  ;;  %vm387_vm3 = vcmask 130048  }
   0x2   :  { %532 = vset.pattern.permute.xlu0 %v595_v1  ;;  %533 = vset.pattern.permute.xlu1 %v595_v1  ;;  %13 = vst [vmem:[#allocation2] sm:$0x1] %v12_v2  ;;  %v538_v5 = vld [vmem:[%s706_s0] ss:$16 sps:$4 sm:$0xff]   ;;  %v539_v6 = vld [vmem:[%s706_s0 + $0x8] ss:$16 sps:$4 sm:$0xff]  }
   0x3   :  { %125 = vmatprep.subr.bf16.mxu0 %v534_v0  ;;  %v33_v7 = vld [vmem:[%s706_s0 + $0x20] sm:$0x11]  ;;  %178 = vmatprep.subr.bf16.mxu1 %v536_v3  ;;  %v34_v9 = vld [vmem:[%s706_s0 + $0x28] sm:$0x11]  ;;  %v41_v18 = vld [vmem:[%s709_s2 + $0x10] sm:$0xff] }
   0x4   :  { %v518_v8 = vcombine.high %v33_v7, %v33_v7  ;;  %v517_v10 = vcombine.low %v33_v7, %v33_v7  ;;  %126 = vmatpush1.bf16.msra.mxu0 %v538_v5  ;;  %179 = vmatpush1.bf16.msra.mxu1 %v539_v6  ;;  %v520_v11 = vcombine.high %v34_v9, %v34_v9  ;;  %v39_v15 = vld [vmem:[%s709_s2] sm:$0xff]  ;;  %v40_v20 = vld [vmem:[%s709_s2 + $0x8] sm:$0xff]  ;;  %v42_v21 = vld [vmem:[%s709_s2 + $0x18] sm:$0xff] }
   0x5   :  { %v519_v12 = vcombine.low %v34_v9, %v34_v9  ;;  %45 = vperm.xlu0 %532, %v39_v15   ;;  %v544_v19 = vld [vmem:[%s708_s1] sm:$0xff]   ;;  %55 = vperm.xlu1 %533, %v41_v18   ;;  %v258_v23 = vld [vmem:[%s710_s4 + $0x8] sm:$0xff] }
   0x6   :  { %v117_v13 = vand.u32 %v518_v8, %v112_v4  ;;  %v114_v14 = vand.u32 %v517_v10, %v112_v4  ;;  %v123_v16 = vand.u32 %v520_v11, %v112_v4  ;;  %v257_v22 = vld [vmem:[%s710_s4] sm:$0xff]  ;;  %v545_v24 = vld [vmem:[%s708_s1 + $0x8] sm:$0xff]  }
   0x7   :  { %v120_v17 = vand.u32 %v519_v12, %v112_v4 }
   0x8   :  { %127 = vmatprep.subr.bf16.mxu0 %v117_v13  ;;  %180 = vmatprep.subr.bf16.mxu1 %v123_v16 }
   0x9   :  { %128 = vmatpush1.bf16.msra.mxu0 %v114_v14  ;;  %181 = vmatpush1.bf16.msra.mxu1 %v120_v17  ;;  %v377_v25 = vld [vmem:[#allocation2] sm:$0x1] }
   0xa   :  { %50 = vperm.xlu0 %532, %v40_v20   ;;  %60 = vperm.xlu1 %533, %v42_v21  }
   0xc   :  { %521 = vmatmul.mubr.msk.bf16.vlgmr.msra.gmra.mrb[0].mxu0 %vm103_vm1, %v544_v19  ;;  %523 = vmatmul.mubr.msk.bf16.vlgmr.msra.gmra.mrb[0].mxu1 %vm103_vm1, %v544_v19 }
   0xd   :  { %167 = vmatprep.mubr.bf16.mxu0 %v595_v1  ;;  %220 = vmatprep.mubr.bf16.mxu1 %v595_v1 }
   0xe   :  { %261 = vperm.xlu0 %532, %v257_v22   ;;  %266 = vperm.xlu1 %533, %v258_v23   ;;  %v546_v23 = vld [vmem:[%s711_s3] sm:$0xff]  }
  0x12   :  { %380 = vperm.xlu0 %532, %v377_v25  }
  0x14   :  { %522 = vmatmul.mubr.msk.bf16.gmra.mrb[4].mxu0 %vm103_vm1, %v545_v24  ;;  %524 = vmatmul.mubr.msk.bf16.gmra.mrb[4].mxu1 %vm103_vm1, %v545_v24 }
  0x15   :  { %310 = vmatprep.mubr.bf16.mxu0 %v595_v1  ;;  %353 = vmatprep.mubr.bf16.mxu1 %v595_v1 }
  0x84   :  { %v46_v26 = vpop.permute.xlu0 %45  ;;  %v56_v27 = vpop.permute.xlu1 %55 }
  0x89   :  { %v51_v28 = vpop.permute.xlu0 %50  ;;  %v61_v45 = vpop.permute.xlu1 %60 }
  0x8d   :  { %v262_v24 = vpop.permute.xlu0 %261  ;;  %v267_v25 = vpop.permute.xlu1 %266 }
  0xdf   :  { %v159_v29 = vpop.f32.mrb[0].mxu0  ;;  %v212_v31 = vpop.f32.mrb[0].mxu1 }
  0xe0   :  { %v160_v30 = vadd.f32 %v159_v29, %v46_v26  ;;  %v161_v32 = vpop.f32.mrb[1].mxu0  ;;  %v213_v33 = vadd.f32 %v212_v31, %v46_v26  ;;  %v214_v35 = vpop.f32.mrb[1].mxu1 }
  0xe1   :  { %v162_v34 = vadd.f32 %v161_v32, %v46_v26  ;;  %v163_v36 = vpop.f32.mrb[2].mxu0  ;;  %v215_v37 = vadd.f32 %v214_v35, %v46_v26  ;;  %v216_v39 = vpop.f32.mrb[2].mxu1 }
  0xe2   :  { %547 = vtanh.f32 %v160_v30  ;;  %v164_v38 = vadd.f32 %v163_v36, %v51_v28  ;;  %v165_v40 = vpop.f32.mrb[3].mxu0  ;;  %v217_v41 = vadd.f32 %v216_v39, %v51_v28  ;;  %v218_v42 = vpop.f32.mrb[3].mxu1 }
  0xe3   :  { %549 = vtanh.f32 %v213_v33  ;;  %v166_v43 = vadd.f32 %v165_v40, %v51_v28  ;;  %v219_v44 = vadd.f32 %v218_v42, %v51_v28 }
  0xe4   :  { %551 = vtanh.f32 %v162_v34 }
  0xe5   :  { %553 = vtanh.f32 %v215_v37 }
  0xe6   :  { %555 = vtanh.f32 %v164_v38 }
  0xe7   :  { %557 = vtanh.f32 %v217_v41  ;;  %v169_v46 = vpop.f32.mrb[4].mxu0  ;;  %v222_v48 = vpop.f32.mrb[4].mxu1 }
  0xe8   :  { %559 = vtanh.f32 %v166_v43  ;;  %v170_v47 = vadd.f32 %v169_v46, %v56_v27  ;;  %v171_v49 = vpop.f32.mrb[5].mxu0  ;;  %v223_v50 = vadd.f32 %v222_v48, %v56_v27  ;;  %v224_v52 = vpop.f32.mrb[5].mxu1 }
  0xe9   :  { %561 = vtanh.f32 %v219_v44  ;;  %v172_v51 = vadd.f32 %v171_v49, %v56_v27  ;;  %v173_v53 = vpop.f32.mrb[6].mxu0  ;;  %v225_v54 = vadd.f32 %v224_v52, %v56_v27  ;;  %v226_v56 = vpop.f32.mrb[6].mxu1 }
  0xea   :  { %563 = vtanh.f32 %v170_v47  ;;  %v174_v55 = vadd.f32 %v173_v53, %v61_v45  ;;  %v175_v57 = vpop.f32.mrb[7].mxu0  ;;  %v227_v58 = vadd.f32 %v226_v56, %v61_v45  ;;  %v228_v59 = vpop.f32.mrb[7].mxu1  ;;  %v376_v53 = vld [vmem:[%s712_s5] sm:$0x1]  ;;  %v596_v56 = vmov 1966171168  }
  0xeb   :  { %565 = vtanh.f32 %v223_v50  ;;  %v176_v61 = vadd.f32 %v175_v57, %v61_v45  ;;  %v229_v63 = vadd.f32 %v228_v59, %v61_v45  ;;  %v480_v57 = vunpack.c.l.s4 %v596_v56  ;;  %v381_v59 = vpop.permute.xlu0 %380 }
  0xec   :  { %v548_v60 = vpop.eup %547  ;;  %567 = vtanh.f32 %v172_v51 }
  0xed   :  { %v550_v62 = vpop.eup %549  ;;  %569 = vtanh.f32 %v225_v54  ;;  %v383_v54 = vlaneseq }
  0xee   :  { %v552_v0 = vpop.eup %551  ;;  %571 = vtanh.f32 %v174_v55 }
  0xef   :  { %v554_v2 = vpop.eup %553  ;;  %573 = vtanh.f32 %v227_v58  ;;  %v384_v55 = vshrl.u32 %v383_v54, 7  ;;  %vm504_vm4 = vcmp.lt.s32.totalorder %v383_v54, 512 }
  0xf0   :  { %v556_v3 = vpop.eup %555  ;;  %575 = vtanh.f32 %v176_v61 }
  0xf1   :  { %v558_v4 = vpop.eup %557  ;;  %577 = vtanh.f32 %v229_v63  ;;  %v247_v5 = vpack.c.bf16 %v556_v3, %v548_v60  ;;  %v385_v58 = vsub.s32 0, %v384_v55  ;;  %v481_v60 = vunpack.c.0.s8 %v480_v57 }
  0xf2   :  { %v560_v6 = vpop.eup %559  ;;  %v249_v7 = vpack.c.bf16 %v558_v4, %v550_v62 }
  0xf3   :  { %v562_v8 = vpop.eup %561  ;;  %v248_v9 = vpack.c.bf16 %v560_v6, %v552_v0  ;;  %v386_v61 = vrot.slane %v381_v59, %v385_v58  ;;  %v484_v3 = vsub.s32 %v481_v60, %v384_v55 }
  0xf4   :  { %v564_v10 = vpop.eup %563  ;;  %v250_v11 = vpack.c.bf16 %v562_v8, %v554_v2 }
  0xf5   :  { %v566_v12 = vpop.eup %565  ;;  %278 = vmatprep.subr.bf16.mxu0 %v248_v9 }
  0xf6   :  { %v568_v13 = vpop.eup %567  ;;  %321 = vmatprep.subr.bf16.mxu1 %v250_v11  ;;  %279 = vmatpush1.bf16.msra.mxu0 %v247_v5 }
  0xf7   :  { %v570_v14 = vpop.eup %569  ;;  %322 = vmatpush1.bf16.msra.mxu1 %v249_v7 }
  0xf8   :  { %v572_v15 = vpop.eup %571 }
  0xf9   :  { %v574_v16 = vpop.eup %573  ;;  %v251_v17 = vpack.c.bf16 %v572_v15, %v564_v10 }
  0xfa   :  { %v576_v18 = vpop.eup %575  ;;  %v253_v19 = vpack.c.bf16 %v574_v16, %v566_v12 }
  0xfb   :  { %v578_v20 = vpop.eup %577  ;;  %v252_v21 = vpack.c.bf16 %v576_v18, %v568_v13 }
  0xfc   :  { %v254_v22 = vpack.c.bf16 %v578_v20, %v570_v14 }
  0xfd   :  { %280 = vmatprep.subr.bf16.mxu0 %v252_v21 }
  0xfe   :  { %323 = vmatprep.subr.bf16.mxu1 %v254_v22  ;;  %281 = vmatpush1.bf16.msra.mxu0 %v251_v17 }
  0xff   :  { %324 = vmatpush1.bf16.msra.mxu1 %v253_v19 }
 0x101   :  { %526 = vmatmul.mubr.msk.bf16.vlgmr.msra.gmra.mrb[8].mxu0 %vm274_vm2, %v546_v23 }
 0x102   :  { %527 = vmatmul.mubr.msk.bf16.vlgmr.msra.gmra.mrb[8].mxu1 %vm274_vm2, %v546_v23  ;;  %423 = vmatprep.mubr.bf16.mxu0 %v595_v1 }
 0x103   :  { %464 = vmatprep.mubr.bf16.mxu1 %v595_v1 }
 0x1d4   :  { %v312_v26 = vpop.f32.mrb[8].mxu0 }
 0x1d5   :  { %v313_v27 = vadd.f32 %v312_v26, %v262_v24  ;;  %v355_v28 = vpop.f32.mrb[8].mxu1  ;;  %v314_v29 = vpop.f32.mrb[9].mxu0 }
 0x1d6   :  { %v356_v30 = vadd.f32 %v355_v28, %v262_v24  ;;  %v315_v31 = vadd.f32 %v314_v29, %v262_v24  ;;  %v357_v32 = vpop.f32.mrb[9].mxu1  ;;  %v316_v33 = vpop.f32.mrb[10].mxu0 }
 0x1d7   :  { %579 = vtanh.f32 %v313_v27  ;;  %v358_v34 = vadd.f32 %v357_v32, %v262_v24  ;;  %v317_v35 = vadd.f32 %v316_v33, %v267_v25  ;;  %v359_v36 = vpop.f32.mrb[10].mxu1  ;;  %v318_v37 = vpop.f32.mrb[11].mxu0 }
 0x1d8   :  { %581 = vtanh.f32 %v356_v30  ;;  %v360_v38 = vadd.f32 %v359_v36, %v267_v25  ;;  %v361_v39 = vpop.f32.mrb[11].mxu1  ;;  %v319_v1 = vadd.f32 %v318_v37, %v267_v25 }
 0x1d9   :  { %583 = vtanh.f32 %v315_v31  ;;  %v362_v40 = vadd.f32 %v361_v39, %v267_v25 }
 0x1da   :  { %585 = vtanh.f32 %v358_v34 }
 0x1db   :  { %587 = vtanh.f32 %v317_v35 }
 0x1dc   :  { %589 = vtanh.f32 %v360_v38 }
 0x1dd   :  { %591 = vtanh.f32 %v319_v1 }
 0x1de   :  { %593 = vtanh.f32 %v362_v40 }
 0x1e1   :  { %v580_v41 = vpop.eup %579 }
 0x1e2   :  { %v582_v42 = vpop.eup %581 }
 0x1e3   :  { %v584_v43 = vpop.eup %583 }
 0x1e4   :  { %v586_v44 = vpop.eup %585 }
 0x1e5   :  { %v588_v45 = vpop.eup %587 }
 0x1e6   :  { %v590_v46 = vpop.eup %589  ;;  %v372_v47 = vpack.c.bf16 %v588_v45, %v580_v41 }
 0x1e7   :  { %v592_v48 = vpop.eup %591  ;;  %v374_v49 = vpack.c.bf16 %v590_v46, %v582_v42 }
 0x1e8   :  { %v594_v50 = vpop.eup %593  ;;  %v373_v51 = vpack.c.bf16 %v592_v48, %v584_v43 }
 0x1e9   :  { %v375_v52 = vpack.c.bf16 %v594_v50, %v586_v44 }
 0x1ea   :  { %391 = vmatprep.subr.bf16.mxu0 %v373_v51 }
 0x1eb   :  { %432 = vmatprep.subr.bf16.mxu1 %v375_v52  ;;  %392 = vmatpush1.bf16.msra.mxu0 %v372_v47 }
 0x1ec   :  { %433 = vmatpush1.bf16.msra.mxu1 %v374_v49 }
 0x1ee   :  { %528 = vmatmul.mubr.msk.bf16.vlgmr.msra.gmra.mrb[12].mxu0 %vm387_vm3, %v376_v53 }
 0x1ef   :  { %529 = vmatmul.mubr.msk.bf16.vlgmr.msra.gmra.mrb[12].mxu1 %vm387_vm3, %v376_v53 }
 0x2c1   :  { %v425_v62 = vpop.f32.mrb[12].mxu0 }
 0x2c2   :  { %v426_v63 = vadd.f32 %v425_v62, %v386_v61  ;;  %v466_v0 = vpop.f32.mrb[12].mxu1  ;;  %v427_v2 = vpop.f32.mrb[13].mxu0 }
 0x2c3   :  { %v467_v4 = vadd.f32 %v466_v0, %v386_v61  ;;  %v428_v5 = vadd.f32 %v427_v2, %v386_v61  ;;  %v468_v6 = vpop.f32.mrb[13].mxu1  ;;  %v429_v7 = vpop.f32.mrb[14].mxu0 }
 0x2c4   :  { %v469_v8 = vadd.f32 %v468_v6, %v386_v61  ;;  %v470_v9 = vpop.f32.mrb[14].mxu1  ;;  %v430_v10 = vpop.f32.mrb[15].mxu0 }
 0x2c5   :  { %v477_v11 = vcombine.low %v426_v63, %v428_v5  ;;  %v471_v12 = vpop.f32.mrb[15].mxu1 }
 0x2c6   :  { %v478_v13 = vcombine.low %v467_v4, %v469_v8 }
 0x2c7   :  { %v485_v14 = vrot.slane %v477_v11, %v484_v3 }
 0x2c8   :  { %v492_v15 = vrot.slane %v478_v13, %v484_v3 }
 0x2ca   :  { %v493_v16 = vcombine.low %v485_v14, %v492_v15 }
 0x2cc   :  { %v500_v17 = vrot.slane %v493_v16, %v484_v3 }
 0x2ce   :  { %506 = vst.msk [vmem:[%s713_s7] sm:$0xf] %vm504_vm4, %v500_v17 }

</bundles_post_ra>
